<compile_context>
chip_gen: v7x
topology: tpu7x:2x2x1
jax: 0.10.0
libtpu: 0.0.40
codegen_flags: <defaults>
</compile_context>

<pallas_src>
import functools

import jax
import jax.numpy as jnp
from jax.experimental import pallas as pl
from jax.experimental.pallas import tpu as pltpu


def _round_up(n, m):
    return ((n + m - 1) // m) * m


def _olsen_norm_kernel(num_features, x_ref, r_max_ref, rho_ref, m_ref, o_ref):
    """One (TB, F) block of rows; parameters are (1, F) and broadcast.

    x_ref     : (TB, F)  input block
    r_max_ref : (1, F)   learnable max rate
    rho_ref   : (1, F)   learnable semi-saturation offset
    m_ref     : (1, F)   learnable pooling gain
    o_ref     : (TB, F)  normalized output block
    """
    x = x_ref[...]                                              # (TB, F)

    # Parameter clamps fused into the kernel (VPU work on a single (1,F) row).
    r_max = jnp.clip(r_max_ref[...], num_features / 10.0, float(num_features))
    rho = jnp.clip(rho_ref[...], 0.0, 3.0)
    m = jnp.clip(m_ref[...], 0.05, 2.0)

    # Row-wise pooled activity (XLU reduce along lanes), epsilon as in torch.
    x_sum = jnp.sum(x, axis=-1, keepdims=True) + 1e-6           # (TB, 1)

    # exponent == 1  ->  x**1 == x, (m*x_sum)**1 == m*x_sum
    numerator = r_max * x                                       # (TB, F)
    denominator = x + rho + m * x_sum                           # (TB, F)
    o_ref[...] = numerator / denominator


def olsen_norm(x, r_max, rho, m, *, max_block_rows=512):
    """Pallas OlsenNorm over the last axis of `x` (any leading dims)."""
    num_features = x.shape[-1]
    lead = x.shape[:-1]
    rows = 1
    for d in lead:
        rows *= d
    x2 = x.reshape(rows, num_features)

    # Row tile: multiple of 8 (f32 sublane), as large as reasonable.
    tb = min(max_block_rows, _round_up(rows, 8))
    rows_padded = _round_up(rows, tb)
    if rows_padded != rows:
        x2 = jnp.pad(x2, ((0, rows_padded - rows), (0, 0)))

    grid = (rows_padded // tb,)
    kernel = functools.partial(_olsen_norm_kernel, num_features)

    out = pl.pallas_call(
        kernel,
        out_shape=jax.ShapeDtypeStruct((rows_padded, num_features), x.dtype),
        grid=grid,
        in_specs=[
            pl.BlockSpec((tb, num_features), lambda i: (i, 0)),
            pl.BlockSpec((1, num_features), lambda i: (0, 0)),   # resident
            pl.BlockSpec((1, num_features), lambda i: (0, 0)),   # resident
            pl.BlockSpec((1, num_features), lambda i: (0, 0)),   # resident
        ],
        out_specs=pl.BlockSpec((tb, num_features), lambda i: (i, 0)),
        compiler_params=pltpu.CompilerParams(
            dimension_semantics=("parallel",)),   # v7x: shard rows across 2 TCs
    )(x2,
      r_max.reshape(1, num_features),
      rho.reshape(1, num_features),
      m.reshape(1, num_features))

    return out[:rows].reshape(*lead, num_features)


def _olsen_norm_ref(x, r_max, rho, m):
    """Pure-JAX reference mirroring the PyTorch forward (for validation)."""
    nf = x.shape[-1]
    r_max = jnp.clip(r_max, nf / 10.0, float(nf))
    rho = jnp.clip(rho, 0.0, 3.0)
    m = jnp.clip(m, 0.05, 2.0)
    s = jnp.sum(x, axis=-1, keepdims=True) + 1e-6
    return (r_max * x) / (x + rho + m * s)


if __name__ == "__main__":
    NUM_FEATURES = 128            # lane-dense last dim for the demo
    BATCH, SEQ = 2, 8             # 16 rows total

    key = jax.random.PRNGKey(0)
    x = jax.random.uniform(key, (BATCH, SEQ, NUM_FEATURES), jnp.float32)

    # Parameter init exactly as in the PyTorch module's __init__.
    r_max = jnp.full((1, NUM_FEATURES), NUM_FEATURES / 2.0, jnp.float32)
    rho = jnp.zeros((1, NUM_FEATURES), jnp.float32)
    m = jnp.full((1, NUM_FEATURES), 0.99, jnp.float32)

    out = jax.jit(olsen_norm)(x, r_max, rho, m)
    jax.block_until_ready(out)

    ref = _olsen_norm_ref(x, r_max, rho, m)
    assert out.shape == x.shape
    assert jnp.allclose(out, ref, rtol=1e-5, atol=1e-6), "mismatch vs reference"

    print("KERNEL_OK")
</pallas_src>

<mosaic_0001>
module attributes {stable_mosaic.version = 11 : i64} {
  func.func @_olsen_norm_kernel(%arg0: i32, %arg1: memref<16x128xf32, #tpu.memory_space<vmem>>, %arg2: memref<1x128xf32, #tpu.memory_space<vmem>>, %arg3: memref<1x128xf32, #tpu.memory_space<vmem>>, %arg4: memref<1x128xf32, #tpu.memory_space<vmem>>, %arg5: memref<16x128xf32, #tpu.memory_space<vmem>>) attributes {dimension_semantics = [#tpu.dimension_semantics<parallel>], iteration_bounds = array<i64: 1>, scalar_prefetch = 0 : i64, scratch_operands = 0 : i64, tpu.core_type = #tpu.core_type<tc>, window_params = [{transform_indices = @transform_0, window_bounds = array<i64: 16, 128>}, {pipeline_mode = #tpu.pipeline_mode<synchronous>, transform_indices = @transform_1, window_bounds = array<i64: 1, 128>}, {pipeline_mode = #tpu.pipeline_mode<synchronous>, transform_indices = @transform_2, window_bounds = array<i64: 1, 128>}, {pipeline_mode = #tpu.pipeline_mode<synchronous>, transform_indices = @transform_3, window_bounds = array<i64: 1, 128>}, {transform_indices = @transform_4, window_bounds = array<i64: 16, 128>}]} {
    %c0 = arith.constant 0 : index
    %c0_0 = arith.constant 0 : index
    %0 = vector.load %arg1[%c0, %c0_0] : memref<16x128xf32, #tpu.memory_space<vmem>>, vector<16x128xf32>
    %c0_1 = arith.constant 0 : index
    %c0_2 = arith.constant 0 : index
    %1 = vector.load %arg2[%c0_1, %c0_2] : memref<1x128xf32, #tpu.memory_space<vmem>>, vector<1x128xf32>
    %cst = arith.constant 1.280000e+01 : f32
    %cst_3 = arith.constant 1.280000e+02 : f32
    %2 = vector.broadcast %cst : f32 to vector<1x128xf32>
    %3 = arith.maximumf %2, %1 : vector<1x128xf32>
    %4 = vector.broadcast %cst_3 : f32 to vector<1x128xf32>
    %5 = arith.minimumf %4, %3 : vector<1x128xf32>
    %c0_4 = arith.constant 0 : index
    %c0_5 = arith.constant 0 : index
    %6 = vector.load %arg3[%c0_4, %c0_5] : memref<1x128xf32, #tpu.memory_space<vmem>>, vector<1x128xf32>
    %cst_6 = arith.constant 0.000000e+00 : f32
    %cst_7 = arith.constant 3.000000e+00 : f32
    %7 = vector.broadcast %cst_6 : f32 to vector<1x128xf32>
    %8 = arith.maximumf %7, %6 : vector<1x128xf32>
    %9 = vector.broadcast %cst_7 : f32 to vector<1x128xf32>
    %10 = arith.minimumf %9, %8 : vector<1x128xf32>
    %c0_8 = arith.constant 0 : index
    %c0_9 = arith.constant 0 : index
    %11 = vector.load %arg4[%c0_8, %c0_9] : memref<1x128xf32, #tpu.memory_space<vmem>>, vector<1x128xf32>
    %cst_10 = arith.constant 5.000000e-02 : f32
    %cst_11 = arith.constant 2.000000e+00 : f32
    %12 = vector.broadcast %cst_10 : f32 to vector<1x128xf32>
    %13 = arith.maximumf %12, %11 : vector<1x128xf32>
    %14 = vector.broadcast %cst_11 : f32 to vector<1x128xf32>
    %15 = arith.minimumf %14, %13 : vector<1x128xf32>
    %cst_12 = arith.constant dense<0.000000e+00> : vector<16xf32>
    %16 = vector.multi_reduction <add>, %0, %cst_12 [1] : vector<16x128xf32> to vector<16xf32>
    %17 = vector.shape_cast %16 : vector<16xf32> to vector<16x1xf32>
    %cst_13 = arith.constant 9.99999997E-7 : f32
    %18 = vector.broadcast %cst_13 : f32 to vector<16x1xf32>
    %19 = arith.addf %17, %18 : vector<16x1xf32>
    %20 = vector.broadcast %5 : vector<1x128xf32> to vector<16x128xf32>
    %21 = arith.mulf %20, %0 : vector<16x128xf32>
    %22 = vector.broadcast %10 : vector<1x128xf32> to vector<16x128xf32>
    %23 = arith.addf %0, %22 : vector<16x128xf32>
    %24 = vector.broadcast %15 : vector<1x128xf32> to vector<16x128xf32>
    %25 = vector.broadcast %19 : vector<16x1xf32> to vector<16x128xf32>
    %26 = arith.mulf %24, %25 : vector<16x128xf32>
    %27 = arith.addf %23, %26 : vector<16x128xf32>
    %28 = arith.divf %21, %27 : vector<16x128xf32>
    %c0_14 = arith.constant 0 : index
    %c0_15 = arith.constant 0 : index
    %29 = vector.load %arg5[%c0_14, %c0_15] : memref<16x128xf32, #tpu.memory_space<vmem>>, vector<16x128xf32>
    tpu.vector_store %arg5[%c0_14, %c0_15], %28 {strides = array<i32>} : memref<16x128xf32, #tpu.memory_space<vmem>>, vector<16x128xf32>,
    return
  }
  func.func @transform_0(%arg0: i32) -> (i32, i32) {
    %c0_i32 = arith.constant 0 : i32
    %c0_i32_0 = arith.constant 0 : i32
    return %arg0, %c0_i32 : i32, i32
  }
  func.func @transform_1(%arg0: i32) -> (i32, i32) {
    %c0_i32 = arith.constant 0 : i32
    %c0_i32_0 = arith.constant 0 : i32
    %c0_i32_1 = arith.constant 0 : i32
    return %c0_i32, %c0_i32_0 : i32, i32
  }
  func.func @transform_2(%arg0: i32) -> (i32, i32) {
    %c0_i32 = arith.constant 0 : i32
    %c0_i32_0 = arith.constant 0 : i32
    %c0_i32_1 = arith.constant 0 : i32
    return %c0_i32, %c0_i32_0 : i32, i32
  }
  func.func @transform_3(%arg0: i32) -> (i32, i32) {
    %c0_i32 = arith.constant 0 : i32
    %c0_i32_0 = arith.constant 0 : i32
    %c0_i32_1 = arith.constant 0 : i32
    return %c0_i32, %c0_i32_0 : i32, i32
  }
  func.func @transform_4(%arg0: i32) -> (i32, i32) {
    %c0_i32 = arith.constant 0 : i32
    %c0_i32_0 = arith.constant 0 : i32
    return %arg0, %c0_i32 : i32, i32
  }
}

</mosaic_0001>

<bundles_post_ra>
// kernel: olsen_norm.1
= control target key start
LH: loop header
LB: loop body
LE: loop exit
PB: predicated region body
PF: predicated region fallthrough
CT: control target
= control target key end

     0   :  { %9 = vsyncpa [#allocation3], 0  ;;  %s222_s0 = inlined_call_operand.hbm [shape: f32[16,128], index: 0, kind: input, shape index: {}]   ;;  %s223_s1 = inlined_call_operand.vmem [shape: f32[1,128], index: 1, kind: input, shape index: {}]   ;;  %s224_s2 = inlined_call_operand.vmem [shape: f32[1,128], index: 2, kind: input, shape index: {}]   ;;  %s225_s3 = inlined_call_operand.vmem [shape: f32[1,128], index: 3, kind: input, shape index: {}]   ;;  %s226_s4 = inlined_call_operand.hbm [shape: f32[16,128], index: 4, kind: output, shape index: {}]  }
   0x1   :  { %10 = vsyncpa [#allocation4], 0  ;;  %s154_s15 = smov [#allocation2]   ;;  %s106_s19 = scalar_lea.hbm %s222_s0, 256 }
   0x2   :  { %s16_s16 = sshll.u32 %s154_s15, 4  ;;  %p107_p0 = scmp.ne.s32.totalorder %s222_s0, %s106_s19  ;;  %s17_s16 = int_to_ptr.vmem [resolvable:$true] %s16_s16 }
   0x3   :  { %p110_p1 = scmp.lt.u32.totalorder %s106_s19, %s222_s0 }
   0x5   :  { %p112_p2 = pnand %p110_p1, %p107_p0 }
   0x7   :  { %115 = shalt.err (!%p112_p2)
}
   0x8   :  { %s116_s24 = scalar_lea.vmem %s17_s16, 256  ;;  %p121_p4 = scmp.lt.s32.totalorder %s17_s16, %s17_s16 }
   0x9   :  { %p117_p3 = scmp.ne.s32.totalorder %s17_s16, %s116_s24  ;;  %p122_p5 = scmp.lt.s32.totalorder %s116_s24, %s116_s24 }
   0xb   :  { %p123_p6 = por %p122_p5, %p121_p4 }
   0xd   :  { %p124_p7 = pnand %p123_p6, %p117_p3 }
   0xf   :  { %127 = shalt.err (!%p124_p7)
}
  0x10   :  { %s155_s25 = smov 128   ;;  %s156_s26 = smov 8  }
  0x11   :  { %22 = dma.hbm_to_vmem [thread:$0]  %s222_s0, 256, %s17_s16, [#allocation3], %s155_s25, %s155_s25, %s156_s26  }
  0x12   :  { %150 = dma.done.wait [#allocation3], 256  }
  0x13   :  { %151 = vsyncadd [#allocation3], 4294967040  ;;  %v32_v0 = vld [vmem:[#allocation2] sm:$0xff]  ;;  %v33_v1 = vld [vmem:[#allocation2 + $0x8] sm:$0xff]  ;;  %v50_v2 = vlaneseq }
  0x14   :  { %43 = vadd.xlane.f32.xlu0 %v32_v0  ;;  %v37_v3 = vld [vmem:[%s224_s2] sm:$0x1] }
  0x15   :  { %v40_v4 = vld [vmem:[%s225_s3] sm:$0x1]  ;;  %v38_v5 = vmax.f32 %v37_v3, 0.0  ;;  %v51_v6 = vshrl.u32 %v50_v2, 7 }
  0x16   :  { %v41_v7 = vmax.f32 %v40_v4, 0.05  ;;  %v34_v12 = vld [vmem:[%s223_s1] sm:$0x1]  ;;  %s157_s1 = smov [#allocation5]  }
  0x17   :  { %v39_v8 = vmin.f32 %v38_v5, 3.0  ;;  %v52_v9 = vsub.s32 0, %v51_v6  ;;  %v35_v17 = vmax.f32 %v34_v12, 12.8  ;;  %s86_s2 = sshll.u32 %s157_s1, 4  ;;  %s87_s2 = int_to_ptr.vmem [resolvable:$true] %s86_s2 }
  0x18   :  { %45 = vadd.xlane.f32.xlu0 %v33_v1  ;;  %v42_v10 = vmin.f32 %v41_v7, 2.0  ;;  %s128_s3 = scalar_lea.vmem %s87_s2, 256  ;;  %p133_p9 = scmp.lt.s32.totalorder %s87_s2, %s87_s2 }
  0x19   :  { %v61_v11 = vrot.slane %v39_v8, %v52_v9  ;;  %v36_v23 = vmin.f32 %v35_v17, 128.0  ;;  %p129_p8 = scmp.ne.s32.totalorder %s87_s2, %s128_s3  ;;  %p134_p10 = scmp.lt.s32.totalorder %s128_s3, %s128_s3 }
  0x1a   :  { %v69_v13 = vrot.slane %v42_v10, %v52_v9 }
  0x1b   :  { %v63_v15 = vadd.f32 %v61_v11, %v32_v0  ;;  %v64_v20 = vadd.f32 %v61_v11, %v33_v1  ;;  %v53_v26 = vrot.slane %v36_v23, %v52_v9  ;;  %p135_p11 = por %p134_p10, %p133_p9 }
  0x1d   :  { %v55_v27 = vmul.f32 %v53_v26, %v32_v0  ;;  %v56_v29 = vmul.f32 %v53_v26, %v33_v1  ;;  %p136_p12 = pnand %p135_p11, %p129_p8 }
  0xa1   :  { %v44_v14 = vpop.xlane.xlu0 %43 }
  0xa2   :  { %v47_v16 = vadd.f32 1e-06, %v44_v14 }
  0xa4   :  { %v71_v18 = vmul.f32 %v69_v13, %v47_v16 }
  0xa5   :  { %v46_v19 = vpop.xlane.xlu0 %45 }
  0xa6   :  { %v73_v21 = vadd.f32 %v71_v18, %v63_v15  ;;  %v48_v22 = vadd.f32 1e-06, %v46_v19 }
  0xa8   :  { %102 = vrcp.f32 %v73_v21  ;;  %v72_v24 = vmul.f32 %v69_v13, %v48_v22 }
  0xaa   :  { %v74_v25 = vadd.f32 %v72_v24, %v64_v20 }
  0xac   :  { %104 = vrcp.f32 %v74_v25 }
  0xb2   :  { %v103_v28 = vpop.eup %102 }
  0xb3   :  { %v76_v30 = vmul.f32 %v103_v28, %v55_v27 }
  0xb5   :  { %79 = vst [vmem:[#allocation5] sm:$0xff] %v76_v30 }
  0xb6   :  { %v105_v31 = vpop.eup %104 }
  0xb7   :  { %v78_v32 = vmul.f32 %v105_v31, %v56_v29 }
  0xb9   :  { %80 = vst [vmem:[#allocation5 + $0x8] sm:$0xff] %v78_v32 }
  0xba   :  { %139 = shalt.err (!%p136_p12)
}
  0xbb   :  { %s140_s10 = scalar_lea.hbm %s226_s4, 256 }
  0xbc   :  { %p141_p13 = scmp.ne.s32.totalorder %s226_s4, %s140_s10  ;;  %p144_p0 = scmp.lt.u32.totalorder %s140_s10, %s226_s4 }
  0xbe   :  { %p146_p1 = pnand %p144_p0, %p141_p13 }
  0xc0   :  { %149 = shalt.err (!%p146_p1)
}
  0xc1   :  { %92 = dma.vmem_to_hbm [thread:$0]  %s87_s2, 256, %s226_s4, [#allocation4], %s155_s25, %s155_s25, %s156_s26  }
  0xc2   :  { %152 = dma.done.wait [#allocation4], 256  }
  0xc3   :  { %153 = vsyncadd [#allocation4], 4294967040 }
  0xc4   :  { %96 = vsyncpa [#allocation3], 1 }
  0xc5   :  { %97 = vsyncpa [#allocation4], 1 }

</bundles_post_ra>
